<compile_context>
chip_gen: v6e
topology: v6e:2x2x1
jax: 0.10.0
libtpu: 0.0.40
codegen_flags: <defaults>
</compile_context>

<pallas_src>
import functools

import jax
import jax.numpy as jnp
from jax.experimental import pallas as pl
from jax.experimental.pallas import tpu as pltpu


_LANE_MAJOR_MAX_E = 64  # below this, put the batch on the lane axis


def _log_sigmoid(x):
    # Numerically stable log(sigmoid(x)) = min(x, 0) - log1p(exp(-|x|)),
    # matching torch.nn.LogSigmoid.
    return jnp.minimum(x, 0.0) - jnp.log1p(jnp.exp(-jnp.abs(x)))


def _skipgram_neg_kernel(ce_ref, on_ref, loss_ref, *, reduce_axis):
    """Per-example skip-gram-neg loss for one batch tile.

    ce_ref : (E, blk) [lane-major, tiny E] or (blk, E) [batch-major] center tile.
    on_ref : (2, *ce_ref.shape) stacked [outside, sum_k negative] tile
             (one stacked input -> fewer DMA descriptors per step).
    loss_ref: (1, blk) or (blk, 1) per-example loss (f32).
    Inputs may be bf16; compute is done in f32.
    """
    ce = ce_ref[...].astype(jnp.float32)
    oe = on_ref[0].astype(jnp.float32)
    ns = on_ref[1].astype(jnp.float32)

    uovc = jnp.sum(oe * ce, axis=reduce_axis, keepdims=True)
    ukvc_sum = -jnp.sum(ns * ce, axis=reduce_axis, keepdims=True)

    # Per-example loss; the tiny mean over B and final negation happen in JAX.
    loss_ref[...] = _log_sigmoid(uovc) + _log_sigmoid(ukvc_sum)


def _vmem_budget_bytes():
    # Generation-aware: ~half of the reported per-core VMEM capacity
    # (v5e/v6e: 128 MiB -> 64 MiB budget; v7x: 64 MiB/TC -> 32 MiB budget).
    try:
        cap = int(pltpu.get_tpu_info().vmem_capacity_bytes)
    except Exception:
        cap = 64 << 20  # conservative fallback (v7x per-TC capacity)
    return int(max(16 << 20, min(cap // 2, 96 << 20)))


def _tile_footprint_bytes(block_b, emb, in_bytes):
    # Double-buffered inputs (ce + 2 stacked tiles) and output, plus the two
    # f32 elementwise-product temporaries (not double-buffered).
    return (2 * 3 * emb * block_b * in_bytes
            + 2 * block_b * 4
            + 2 * emb * block_b * 4)


def _choose_block_b(batch, emb, in_bytes, budget):
    block_b = 128
    for cand in (16384, 8192, 4096, 2048, 1024, 512, 256, 128):
        if _tile_footprint_bytes(cand, emb, in_bytes) <= budget:
            block_b = cand
            break
    # Guarantee >= 4 grid tiles when the batch allows it: both v7x TensorCores
    # get work under dimension_semantics=("parallel",) and the BlockSpec
    # pipeline has DMAs to overlap with compute.
    while block_b > 128 and pl.cdiv(batch, block_b) < 4:
        block_b //= 2
    return block_b


def skipgram_neg_loss(emb_center, emb_outside, center, outside, negative):
    """center/outside: (B, 1) int32 indices; negative: (B, K) int32 indices."""
    B = int(center.shape[0])
    E = int(emb_center.shape[1])
    dtype = emb_outside.dtype

    # ---- glue (plain JAX): embedding gathers + algebraic collapse of K -----
    # sum_k dot(n_k, c) == dot(sum_k n_k, c): collapse in f32 before the kernel
    # so the (B, K, E) tensor never crosses the pallas_call boundary.
    ce = emb_center[center[:, 0]]                                      # (B, E)
    oe = emb_outside[outside[:, 0]]                                    # (B, E)
    ns = jnp.sum(emb_outside[negative].astype(jnp.float32), axis=1).astype(dtype)
    # TODO(synk): at production B/K, fuse the negative gather + K-sum into the
    # kernel (indices via PrefetchScalarGridSpec scalar prefetch, emb_outside
    # kept in HBM with memory_space=pl.ANY, manual row DMA + f32 accumulation)
    # so the (B, K, E) gather never materializes in HBM either.

    in_bytes = jnp.dtype(dtype).itemsize
    budget = _vmem_budget_bytes()
    block_b = _choose_block_b(B, E, in_bytes, budget)
    b_pad = pl.cdiv(B, block_b) * block_b
    pad = b_pad - B

    if E < _LANE_MAJOR_MAX_E:
        # Tiny E: batch on the lane axis so every vreg carries 128 examples;
        # the per-example dot is a cheap sublane reduce.
        def prep(x):
            return jnp.pad(x, ((0, pad), (0, 0))).T                   # (E, b_pad)
        ce_in = prep(ce)
        on_in = jnp.stack([prep(oe), prep(ns)], axis=0)               # (2, E, b_pad)
        in_specs = [
            pl.BlockSpec((E, block_b), lambda i: (0, i)),
            pl.BlockSpec((2, E, block_b), lambda i: (0, 0, i)),
        ]
        out_shape = jax.ShapeDtypeStruct((1, b_pad), jnp.float32)
        out_spec = pl.BlockSpec((1, block_b), lambda i: (0, i))
        reduce_axis = 0
    else:
        # E >= 64: keep the natural (B, E) layout (no host-side relayout --
        # the transpose would cost as much HBM traffic as the kernel itself)
        # and reduce over the lane axis inside the kernel.
        def prep(x):
            return jnp.pad(x, ((0, pad), (0, 0)))                     # (b_pad, E)
        ce_in = prep(ce)
        on_in = jnp.stack([prep(oe), prep(ns)], axis=0)               # (2, b_pad, E)
        in_specs = [
            pl.BlockSpec((block_b, E), lambda i: (i, 0)),
            pl.BlockSpec((2, block_b, E), lambda i: (0, i, 0)),
        ]
        out_shape = jax.ShapeDtypeStruct((b_pad, 1), jnp.float32)
        out_spec = pl.BlockSpec((block_b, 1), lambda i: (i, 0))
        reduce_axis = -1

    tile_bytes = _tile_footprint_bytes(block_b, E, in_bytes)
    vmem_limit = int(min(budget, max(tile_bytes + (4 << 20), 16 << 20)))

    per_example = pl.pallas_call(
        functools.partial(_skipgram_neg_kernel, reduce_axis=reduce_axis),
        out_shape=out_shape,
        grid_spec=pltpu.PrefetchScalarGridSpec(
            num_scalar_prefetch=0,
            grid=(b_pad // block_b,),
            in_specs=in_specs,
            out_specs=out_spec,
        ),
        compiler_params=pltpu.CompilerParams(
            # Independent batch tiles -> shard across v7x's 2 TensorCores.
            dimension_semantics=("parallel",),
            vmem_limit_bytes=vmem_limit,
        ),
    )(ce_in, on_in)

    # Final tiny reduction in JAX: drop padded rows, mean, negate.
    return -jnp.mean(per_example.reshape(-1)[:B])


def _reference_loss(emb_center, emb_outside, center, outside, negative):
    # Mirrors the PyTorch module op-for-op (keeps the (B, K, E) intermediate).
    ce = emb_center[center]                                   # (B, 1, E)
    oe = emb_outside[outside]                                 # (B, 1, E)
    ne = emb_outside[negative]                                # (B, K, E)
    uovc = jnp.einsum("bie,bje->bi", oe, ce)                  # (B, 1)
    ukvc = -jnp.einsum("bke,bje->bk", ne, ce)                 # (B, K)
    ukvc_sum = jnp.sum(ukvc, axis=1).reshape(-1, 1)           # (B, 1)
    loss = jax.nn.log_sigmoid(uovc) + jax.nn.log_sigmoid(ukvc_sum)
    return -jnp.mean(loss)


if __name__ == "__main__":
    key = jax.random.PRNGKey(0)

    # ---- Case 1: the module's own sizes (emb_size = 2, tiny vocab) ---------
    k1, k2, k3, k4, k5, k6 = jax.random.split(key, 6)
    voc_size, emb_size, B, K = 20, 2, 6, 5
    emb_center = jax.random.normal(k1, (voc_size, emb_size), dtype=jnp.float32)
    emb_outside = jax.random.normal(k2, (voc_size, emb_size), dtype=jnp.float32)
    center = jax.random.randint(k3, (B, 1), 0, voc_size, dtype=jnp.int32)
    outside = jax.random.randint(k4, (B, 1), 0, voc_size, dtype=jnp.int32)
    negative = jax.random.randint(k5, (B, K), 0, voc_size, dtype=jnp.int32)

    loss = skipgram_neg_loss(emb_center, emb_outside, center, outside, negative)
    jax.block_until_ready(loss)
    ref = _reference_loss(emb_center, emb_outside, center, outside, negative)
    assert jnp.allclose(loss, ref, rtol=1e-5, atol=1e-5), (loss, ref)

    # ---- Case 2: wider embeddings -> exercises the no-transpose path -------
    k1, k2, k3, k4, k5 = jax.random.split(k6, 5)
    voc_size, emb_size, B, K = 64, 128, 48, 7
    emb_center = jax.random.normal(k1, (voc_size, emb_size), dtype=jnp.float32)
    emb_outside = jax.random.normal(k2, (voc_size, emb_size), dtype=jnp.float32)
    center = jax.random.randint(k3, (B, 1), 0, voc_size, dtype=jnp.int32)
    outside = jax.random.randint(k4, (B, 1), 0, voc_size, dtype=jnp.int32)
    negative = jax.random.randint(k5, (B, K), 0, voc_size, dtype=jnp.int32)

    loss2 = skipgram_neg_loss(emb_center, emb_outside, center, outside, negative)
    jax.block_until_ready(loss2)
    ref2 = _reference_loss(emb_center, emb_outside, center, outside, negative)
    assert jnp.allclose(loss2, ref2, rtol=1e-4, atol=1e-4), (loss2, ref2)

    print("KERNEL_OK")
</pallas_src>

<mosaic_0001>
module attributes {stable_mosaic.version = 11 : i64} {
  func.func @_skipgram_neg_kernel(%arg0: i32, %arg1: memref<2x128xf32, #tpu.memory_space<vmem>>, %arg2: memref<2x2x128xf32, #tpu.memory_space<vmem>>, %arg3: memref<1x128xf32, #tpu.memory_space<vmem>>) attributes {dimension_semantics = [#tpu.dimension_semantics<parallel>], iteration_bounds = array<i64: 1>, scalar_prefetch = 0 : i64, scratch_operands = 0 : i64, tpu.core_type = #tpu.core_type<tc>, window_params = [{transform_indices = @transform_0, window_bounds = array<i64: 2, 128>}, {transform_indices = @transform_1, window_bounds = array<i64: 2, 2, 128>}, {transform_indices = @transform_2, window_bounds = array<i64: 1, 128>}]} {
    %c0 = arith.constant 0 : index
    %c0_0 = arith.constant 0 : index
    %0 = vector.load %arg1[%c0, %c0_0] : memref<2x128xf32, #tpu.memory_space<vmem>>, vector<2x128xf32>
    %c0_1 = arith.constant 0 : index
    %c0_2 = arith.constant 0 : index
    %c0_3 = arith.constant 0 : index
    %1 = vector.load %arg2[%c0_1, %c0_2, %c0_3] : memref<2x2x128xf32, #tpu.memory_space<vmem>>, vector<1x2x128xf32>
    %2 = vector.shape_cast %1 : vector<1x2x128xf32> to vector<2x128xf32>
    %c1 = arith.constant 1 : index
    %c0_4 = arith.constant 0 : index
    %c0_5 = arith.constant 0 : index
    %3 = vector.load %arg2[%c1, %c0_4, %c0_5] : memref<2x2x128xf32, #tpu.memory_space<vmem>>, vector<1x2x128xf32>
    %4 = vector.shape_cast %3 : vector<1x2x128xf32> to vector<2x128xf32>
    %5 = arith.mulf %2, %0 : vector<2x128xf32>
    %cst = arith.constant dense<0.000000e+00> : vector<128xf32>
    %6 = vector.multi_reduction <add>, %5, %cst [0] : vector<2x128xf32> to vector<128xf32>
    %7 = vector.shape_cast %6 : vector<128xf32> to vector<1x128xf32>
    %8 = arith.mulf %4, %0 : vector<2x128xf32>
    %cst_6 = arith.constant dense<0.000000e+00> : vector<128xf32>
    %9 = vector.multi_reduction <add>, %8, %cst_6 [0] : vector<2x128xf32> to vector<128xf32>
    %10 = vector.shape_cast %9 : vector<128xf32> to vector<1x128xf32>
    %cst_7 = arith.constant 0.000000e+00 : f32
    %11 = vector.broadcast %cst_7 : f32 to vector<1x128xf32>
    %12 = arith.subf %11, %10 : vector<1x128xf32>
    %cst_8 = arith.constant 0.000000e+00 : f32
    %13 = vector.broadcast %cst_8 : f32 to vector<1x128xf32>
    %14 = arith.minimumf %7, %13 : vector<1x128xf32>
    %15 = math.absf %7 : vector<1x128xf32>
    %cst_9 = arith.constant 0.000000e+00 : f32
    %16 = vector.broadcast %cst_9 : f32 to vector<1x128xf32>
    %17 = arith.subf %16, %15 : vector<1x128xf32>
    %18 = math.exp %17 : vector<1x128xf32>
    %19 = math.log1p %18 : vector<1x128xf32>
    %20 = arith.subf %14, %19 : vector<1x128xf32>
    %cst_10 = arith.constant 0.000000e+00 : f32
    %21 = vector.broadcast %cst_10 : f32 to vector<1x128xf32>
    %22 = arith.minimumf %12, %21 : vector<1x128xf32>
    %23 = math.absf %12 : vector<1x128xf32>
    %cst_11 = arith.constant 0.000000e+00 : f32
    %24 = vector.broadcast %cst_11 : f32 to vector<1x128xf32>
    %25 = arith.subf %24, %23 : vector<1x128xf32>
    %26 = math.exp %25 : vector<1x128xf32>
    %27 = math.log1p %26 : vector<1x128xf32>
    %28 = arith.subf %22, %27 : vector<1x128xf32>
    %29 = arith.addf %20, %28 : vector<1x128xf32>
    %c0_12 = arith.constant 0 : index
    %c0_13 = arith.constant 0 : index
    %30 = vector.load %arg3[%c0_12, %c0_13] : memref<1x128xf32, #tpu.memory_space<vmem>>, vector<1x128xf32>
    tpu.vector_store %arg3[%c0_12, %c0_13], %29 {strides = array<i32>} : memref<1x128xf32, #tpu.memory_space<vmem>>, vector<1x128xf32>,
    return
  }
  func.func @transform_0(%arg0: i32) -> (i32, i32) {
    %c0_i32 = arith.constant 0 : i32
    %c0_i32_0 = arith.constant 0 : i32
    return %c0_i32, %arg0 : i32, i32
  }
  func.func @transform_1(%arg0: i32) -> (i32, i32, i32) {
    %c0_i32 = arith.constant 0 : i32
    %c0_i32_0 = arith.constant 0 : i32
    %c0_i32_1 = arith.constant 0 : i32
    return %c0_i32, %c0_i32_0, %arg0 : i32, i32, i32
  }
  func.func @transform_2(%arg0: i32) -> (i32, i32) {
    %c0_i32 = arith.constant 0 : i32
    %c0_i32_0 = arith.constant 0 : i32
    return %c0_i32, %arg0 : i32, i32
  }
}

</mosaic_0001>

<bundles_post_ra>
// kernel: tpu_custom_call.1
= control target key start
LH: loop header
LB: loop body
LE: loop exit
PB: predicated region body
PF: predicated region fallthrough
CT: control target
= control target key end

     0   :  { %7 = vsyncpa [#allocation3], 0  ;;  %s216_s0 = inlined_call_operand.hbm [shape: f32[2,128], index: 0, kind: input, shape index: {}]   ;;  %s217_s1 = inlined_call_operand.hbm [shape: f32[2,2,128], index: 1, kind: input, shape index: {}]   ;;  %s218_s2 = inlined_call_operand.hbm [shape: f32[1,128], index: 2, kind: output, shape index: {}]  }
   0x1   :  { %8 = vsyncpa [#allocation6], 0 }
   0x2   :  { %9 = vsyncpa [#allocation4], 0  ;;  %s187_s9 = smov [#allocation2]   ;;  %s188_s11 = smov [#allocation5]  }
   0x3   :  { %s16_s10 = sshll.u32 %s187_s9, 4  ;;  %s25_s12 = sshll.u32 %s188_s11, 4  ;;  %s17_s10 = int_to_ptr.vmem [resolvable:$true] %s16_s10  ;;  %s26_s12 = int_to_ptr.vmem [resolvable:$true] %s25_s12 }
   0x4   :  { %s129_s13 = scalar_lea.vmem %s17_s10, 32  ;;  %p134_p1 = scmp.lt.s32.totalorder %s17_s10, %s17_s10 }
   0x5   :  { %p130_p0 = scmp.ne.s32.totalorder %s17_s10, %s129_s13  ;;  %p135_p2 = scmp.lt.s32.totalorder %s129_s13, %s129_s13 }
   0x7   :  { %p136_p3 = por %p135_p2, %p134_p1 }
   0x9   :  { %p137_p4 = pnand %p136_p3, %p130_p0 }
   0xb   :  { %140 = shalt.err (!%p137_p4)
}
   0xc   :  { %19 = dma.hbm_to_vmem [thread:$0]  %s216_s0, 32, %s17_s10, [#allocation3]  }
   0xd   :  { %s149_s16 = scalar_lea.vmem %s26_s12, 64  ;;  %p154_p6 = scmp.lt.s32.totalorder %s26_s12, %s26_s12 }
   0xe   :  { %p150_p5 = scmp.ne.s32.totalorder %s26_s12, %s149_s16  ;;  %p155_p7 = scmp.lt.s32.totalorder %s149_s16, %s149_s16 }
  0x10   :  { %p156_p8 = por %p155_p7, %p154_p6 }
  0x12   :  { %p157_p9 = pnand %p156_p8, %p150_p5 }
  0x14   :  { %160 = shalt.err (!%p157_p9)
}
  0x15   :  { %s189_s17 = smov 32   ;;  %s190_s18 = smov 2  }
  0x16   :  { %31 = dma.hbm_to_vmem [thread:$0]  %s217_s1, 64, %s26_s12, [#allocation6], %s189_s17, %s189_s17, %s190_s18  }
  0x17   :  { %181 = dma.done.wait [#allocation3], 32  }
  0x18   :  { %182 = vsyncadd [#allocation3], 4294967264 }
  0x19   :  { %183 = dma.done.wait [#allocation6], 64  }
  0x1a   :  { %184 = vsyncadd [#allocation6], 4294967232  ;;  %vm43_vm0 = vcmask 1041408   ;;  %v38_v0 = vld [vmem:[#allocation2] sm:$0x3]  ;;  %s191_s0 = smov [#allocation7]  }
  0x1b   :  { %v39_v1 = vld [vmem:[#allocation5] sm:$0x3]  ;;  %v41_v2 = vld [vmem:[#allocation5 + $0x2] sm:$0x3]  ;;  %s98_s1 = sshll.u32 %s191_s0, 4  ;;  %s99_s1 = int_to_ptr.vmem [resolvable:$true] %s98_s1 }
  0x1c   :  { %v42_v3 = vmul.f32 %v39_v1, %v38_v0  ;;  %v51_v4 = vmul.f32 %v41_v2, %v38_v0  ;;  %s161_s21 = scalar_lea.vmem %s99_s1, 16  ;;  %s165_s22 = scalar_lea.vmem %s99_s1, 32 }
  0x1d   :  { %p162_p10 = scmp.ne.s32.totalorder %s99_s1, %s161_s21  ;;  %p166_p11 = scmp.lt.s32.totalorder %s99_s1, %s99_s1 }
  0x1e   :  { %v44_v5 = vsel %vm43_vm0, %v42_v3, 0.0  ;;  %v52_v6 = vsel %vm43_vm0, %v51_v4, 0.0  ;;  %p167_p12 = scmp.lt.s32.totalorder %s165_s22, %s161_s21 }
  0x1f   :  { %v45_v7 = vrot.slane %v44_v5, 4  ;;  %v53_v8 = vrot.slane %v52_v6, 4 }
  0x20   :  { %p168_p13 = por %p167_p12, %p166_p11 }
  0x21   :  { %v46_v9 = vadd.f32 %v45_v7, %v44_v5  ;;  %v54_v10 = vadd.f32 %v53_v8, %v52_v6 }
  0x22   :  { %p169_p0 = pnand %p168_p13, %p162_p10 }
  0x23   :  { %v47_v11 = vrot.slane %v46_v9, 2  ;;  %v55_v12 = vrot.slane %v54_v10, 2 }
  0x25   :  { %v48_v13 = vadd.f32 %v47_v11, %v46_v9  ;;  %v56_v14 = vadd.f32 %v55_v12, %v54_v10 }
  0x27   :  { %v49_v15 = vrot.slane %v48_v13, 1  ;;  %v57_v16 = vrot.slane %v56_v14, 1 }
  0x29   :  { %v50_v17 = vadd.f32 %v49_v15, %v48_v13  ;;  %v58_v18 = vadd.f32 %v57_v16, %v56_v14 }
  0x2b   :  { %v59_v19 = vsub.f32 0.0, %v58_v18  ;;  %v61_v20 = vand.u32 2147483647, %v50_v17  ;;  %v60_v38 = vmin.f32 %v50_v17, 0.0 }
  0x2d   :  { %v62_v21 = vsub.f32 0.0, %v61_v20  ;;  %v76_v22 = vand.u32 2147483647, %v59_v19  ;;  %v75_v42 = vmin.f32 %v59_v19, 0.0 }
  0x2f   :  { %v63_v23 = vmul.f32 1.442695, %v62_v21  ;;  %v77_v24 = vsub.f32 0.0, %v76_v22 }
  0x31   :  { %113 = vpow2.f32 %v63_v23  ;;  %v78_v25 = vmul.f32 1.442695, %v77_v24 }
  0x33   :  { %115 = vpow2.f32 %v78_v25 }
  0x3e   :  { %v114_v26 = vpop.eup %113 }
  0x3f   :  { %v65_v27 = vadd.f32 1.0, %v114_v26  ;;  %v68_v30 = vmul.f32 -0.5, %v114_v26  ;;  %v71_v33 = vand.u32 2147483647, %v114_v26 }
  0x40   :  { %v116_v28 = vpop.eup %115 }
  0x41   :  { %117 = vlog2.f32 %v65_v27  ;;  %v80_v29 = vadd.f32 1.0, %v116_v28  ;;  %v83_v31 = vmul.f32 -0.5, %v116_v28  ;;  %v69_v32 = vadd.f32 1.0, %v68_v30 }
  0x42   :  { %v86_v35 = vand.u32 2147483647, %v116_v28  ;;  %vm72_vm1 = vcmp.lt.f32.partialorder %v71_v33, 0.0004427343 }
  0x43   :  { %119 = vlog2.f32 %v80_v29  ;;  %v84_v34 = vadd.f32 1.0, %v83_v31  ;;  %v70_v36 = vmul.f32 %v114_v26, %v69_v32 }
  0x44   :  { %vm87_vm2 = vcmp.lt.f32.partialorder %v86_v35, 0.0004427343 }
  0x45   :  { %v85_v40 = vmul.f32 %v116_v28, %v84_v34 }
  0x4e   :  { %v118_v37 = vpop.eup %117 }
  0x4f   :  { %v67_v39 = vmul.f32 0.6931472, %v118_v37 }
  0x50   :  { %v120_v41 = vpop.eup %119 }
  0x51   :  { %v73_v43 = vsel %vm72_vm1, %v70_v36, %v67_v39  ;;  %v82_v44 = vmul.f32 0.6931472, %v120_v41 }
  0x52   :  { %v74_v45 = vsub.f32 %v60_v38, %v73_v43 }
  0x53   :  { %v88_v46 = vsel %vm87_vm2, %v85_v40, %v82_v44 }
  0x54   :  { %v89_v47 = vsub.f32 %v75_v42, %v88_v46 }
  0x56   :  { %v90_v48 = vadd.f32 %v89_v47, %v74_v45 }
  0x58   :  { %91 = vst [vmem:[#allocation7] sm:$0x1] %v90_v48 }
  0x59   :  { %172 = shalt.err (!%p169_p0)
}
  0x5a   :  { %101 = dma.vmem_to_hbm [thread:$0]  %s99_s1, 16, %s218_s2, [#allocation4]  }
  0x5b   :  { %185 = dma.done.wait [#allocation4], 16  }
  0x5c   :  { %186 = vsyncadd [#allocation4], 4294967280 }
  0x5d   :  { %105 = vsyncpa [#allocation3], 1 }
  0x5e   :  { %106 = vsyncpa [#allocation6], 1 }
  0x5f   :  { %107 = vsyncpa [#allocation4], 1 }

</bundles_post_ra>
